<compile_context>
chip_gen: v5e
topology: v5e:2x2
jax: 0.10.0
libtpu: 0.0.40
codegen_flags: <defaults>
</compile_context>

<pallas_src>
import math

import jax
import jax.numpy as jnp
from jax.experimental import pallas as pl
from jax.experimental.pallas import tpu as pltpu


# ---------------------------------------------------------------------------
# Kernel: tiled  y = x @ W + b   (f32 accumulation, bias added in the epilogue)
# ---------------------------------------------------------------------------
def _dense_matmul_bias_kernel(x_ref, w_ref, b_ref, o_ref, acc_ref):
    # x_ref: (tm, tk)  w_ref: (tk, tn)  b_ref: (1, tn)  o_ref: (tm, tn)
    k = pl.program_id(2)

    @pl.when(k == 0)
    def _init():
        acc_ref[...] = jnp.zeros_like(acc_ref)

    acc_ref[...] += jnp.dot(x_ref[...], w_ref[...],
                            preferred_element_type=jnp.float32)

    @pl.when(k == pl.num_programs(2) - 1)
    def _finalize():
        # Bias add + downcast once per output tile, in f32 (v5e has no bf16 VALU).
        o_ref[...] = (acc_ref[...] + b_ref[...].astype(jnp.float32)).astype(o_ref.dtype)


def _pick_tile(dim: int, candidates) -> int:
    """Largest candidate tile that divides `dim`; otherwise the full dim
    (full-dim blocks are exempt from the (8,128) divisibility rule)."""
    for t in candidates:
        if t <= dim and dim % t == 0:
            return t
    return dim


# ---------------------------------------------------------------------------
# Wrapper
# ---------------------------------------------------------------------------
def grouped_linear(x, weights, biases, *, groups: int, shuffle: bool):
    """x: (..., input_size); weights: (groups, hid_pg, in_pg) (torch Linear layout);
    biases: (groups, hid_pg). Returns (..., groups * hid_pg)."""
    *lead, input_size = x.shape
    assert input_size % groups == 0
    in_pg = input_size // groups
    hid_pg = weights.shape[1]
    hidden_size = groups * hid_pg

    B = 1
    for d in lead:
        B *= int(d)

    # Activations: only free reshapes of leading dims (no transposes, no HBM copies).
    x2 = x.reshape(B, input_size)

    # --- weight prep (tiny vs. activations; in a real model precomputed once) ---
    # Block-diagonal dense weight: dense[g*in_pg+i, g*hid_pg+o] = weights[g, o, i]
    wT = jnp.transpose(weights, (0, 2, 1))                     # (G, in_pg, hid_pg)
    eye = jnp.eye(groups, dtype=wT.dtype)                      # (G, G)
    w_dense = (wT[:, :, None, :] * eye[:, None, :, None]).reshape(input_size, hidden_size)
    b_dense = biases.reshape(1, hidden_size)

    if shuffle and groups > 1:
        # Fold the channel shuffle (view(-1, hid_pg, G).transpose(-1,-2).reshape)
        # into a column permutation of the weight / bias:
        #   out_shuffled[:, j*hid_pg + i] = out[:, i*groups + j]
        perm = jnp.arange(hidden_size).reshape(hid_pg, groups).T.reshape(-1)
        w_dense = w_dense[:, perm]
        b_dense = b_dense[:, perm]

    # --- tiling (exact-divisor tiles; generation-safe VMEM budget) ---
    tm = _pick_tile(B, (1024, 512, 256, 128, 64, 32, 16, 8))
    tn = _pick_tile(hidden_size, (512, 256, 128))
    tk = _pick_tile(input_size, (512, 256, 128))
    grid = (B // tm, hidden_size // tn, input_size // tk)

    itemsize = jnp.dtype(x.dtype).itemsize
    cost = pl.CostEstimate(
        flops=2 * B * input_size * hidden_size,
        transcendentals=0,
        bytes_accessed=(B * input_size * itemsize
                        + input_size * hidden_size * jnp.dtype(w_dense.dtype).itemsize
                        + hidden_size * jnp.dtype(b_dense.dtype).itemsize
                        + B * hidden_size * itemsize),
    )

    out = pl.pallas_call(
        _dense_matmul_bias_kernel,
        out_shape=jax.ShapeDtypeStruct((B, hidden_size), x.dtype),
        grid_spec=pltpu.PrefetchScalarGridSpec(
            num_scalar_prefetch=0,
            grid=grid,
            in_specs=[
                pl.BlockSpec((tm, tk), lambda i, j, k: (i, k)),   # x tile
                pl.BlockSpec((tk, tn), lambda i, j, k: (k, j)),   # block-diag weight tile
                pl.BlockSpec((1, tn), lambda i, j, k: (0, j)),    # bias tile
            ],
            out_specs=pl.BlockSpec((tm, tn), lambda i, j, k: (i, j)),
            scratch_shapes=[pltpu.VMEM((tm, tn), jnp.float32)],
        ),
        compiler_params=pltpu.CompilerParams(
            dimension_semantics=("parallel", "parallel", "arbitrary"),
            vmem_limit_bytes=32 * 1024 * 1024,
        ),
        cost_estimate=cost,
    )(x2, w_dense, b_dense)

    return out.reshape(*lead, hidden_size)


# ---------------------------------------------------------------------------
# Pure-JAX reference mirroring the PyTorch forward exactly
# ---------------------------------------------------------------------------
def reference_grouped_linear(x, weights, biases, *, groups, shuffle):
    in_pg = x.shape[-1] // groups
    hid_pg = weights.shape[1]
    outs = []
    for g in range(groups):
        xs = x[..., g * in_pg:(g + 1) * in_pg]
        outs.append(xs @ weights[g].T + biases[g])
    out = jnp.concatenate(outs, axis=-1)
    if shuffle and groups > 1:
        orig_shape = out.shape
        out = out.reshape(-1, hid_pg, groups)
        out = jnp.swapaxes(out, -1, -2)
        out = out.reshape(orig_shape)
    return out


def _run_case(key, lead_shape, input_size, hidden_size, groups, shuffle):
    in_pg = input_size // groups
    hid_pg = hidden_size // groups
    kx, kw, kb = jax.random.split(key, 3)
    x = jax.random.normal(kx, (*lead_shape, input_size), dtype=jnp.float32)
    bound = 1.0 / math.sqrt(in_pg)
    weights = jax.random.uniform(kw, (groups, hid_pg, in_pg),
                                 minval=-bound, maxval=bound, dtype=jnp.float32)
    biases = jax.random.uniform(kb, (groups, hid_pg),
                                minval=-bound, maxval=bound, dtype=jnp.float32)

    y = grouped_linear(x, weights, biases, groups=groups, shuffle=shuffle)
    y = jax.block_until_ready(y)
    y_ref = reference_grouped_linear(x, weights, biases, groups=groups, shuffle=shuffle)

    assert y.shape == (*lead_shape, hidden_size), y.shape
    assert jnp.allclose(y, y_ref, atol=1e-5, rtol=1e-5), "mismatch vs reference"


if __name__ == "__main__":
    key = jax.random.PRNGKey(0)
    k1, k2 = jax.random.split(key)

    # Case 1: input_size=64, hidden_size=64, groups=4, shuffle=True, x=(2,4,64)
    _run_case(k1, (2, 4), 64, 64, 4, True)

    # Case 2: groups=2, hidden=128, leading dims flatten to a non-multiple-of-8 B.
    _run_case(k2, (3, 5), 64, 128, 2, True)

    print("KERNEL_OK")
</pallas_src>

<mosaic_0001>
module attributes {stable_mosaic.version = 11 : i64} {
  func.func @_dense_matmul_bias_kernel(%arg0: i32, %arg1: i32, %arg2: i32, %arg3: memref<8x64xf32, #tpu.memory_space<vmem>>, %arg4: memref<64x64xf32, #tpu.memory_space<vmem>>, %arg5: memref<1x64xf32, #tpu.memory_space<vmem>>, %arg6: memref<8x64xf32, #tpu.memory_space<vmem>>, %arg7: memref<8x64xf32, #tpu.memory_space<vmem>>) attributes {dimension_semantics = [#tpu.dimension_semantics<parallel>, #tpu.dimension_semantics<parallel>, #tpu.dimension_semantics<arbitrary>], iteration_bounds = array<i64: 1, 1, 1>, scalar_prefetch = 0 : i64, scratch_operands = 1 : i64, tpu.core_type = #tpu.core_type<tc>, window_params = [{transform_indices = @transform_0, window_bounds = array<i64: 8, 64>}, {transform_indices = @transform_1, window_bounds = array<i64: 64, 64>}, {transform_indices = @transform_2, window_bounds = array<i64: 1, 64>}, {transform_indices = @transform_3, window_bounds = array<i64: 8, 64>}]} {
    %c0_i32 = arith.constant 0 : i32
    %0 = arith.cmpi eq, %arg2, %c0_i32 : i32
    %1 = arith.extui %0 : i1 to i32
    %c0_i32_0 = arith.constant 0 : i32
    %2 = arith.cmpi ne, %1, %c0_i32_0 : i32
    scf.if %2 {
      %cst_10 = arith.constant 0.000000e+00 : f32
      %12 = vector.broadcast %cst_10 : f32 to vector<8x64xf32>
      %c0_11 = arith.constant 0 : index
      %c0_12 = arith.constant 0 : index
      %13 = vector.load %arg7[%c0_11, %c0_12] : memref<8x64xf32, #tpu.memory_space<vmem>>, vector<8x64xf32>
      tpu.vector_store %arg7[%c0_11, %c0_12], %12 {strides = array<i32>} : memref<8x64xf32, #tpu.memory_space<vmem>>, vector<8x64xf32>,
    } else {
    }
    %c0 = arith.constant 0 : index
    %c0_1 = arith.constant 0 : index
    %3 = vector.load %arg7[%c0, %c0_1] : memref<8x64xf32, #tpu.memory_space<vmem>>, vector<8x64xf32>
    %c0_2 = arith.constant 0 : index
    %c0_3 = arith.constant 0 : index
    %4 = vector.load %arg3[%c0_2, %c0_3] : memref<8x64xf32, #tpu.memory_space<vmem>>, vector<8x64xf32>
    %c0_4 = arith.constant 0 : index
    %c0_5 = arith.constant 0 : index
    %5 = vector.load %arg4[%c0_4, %c0_5] : memref<64x64xf32, #tpu.memory_space<vmem>>, vector<64x64xf32>
    %cst = arith.constant dense<0.000000e+00> : vector<8x64xf32>
    %6 = tpu.matmul %4, %5, %cst {dimension_numbers = #tpu.dot_dimension_numbers<[1], [0], [0], [1], [0, 0, 1, 1], [], []>} : vector<8x64xf32>, vector<64x64xf32>, vector<8x64xf32> -> vector<8x64xf32>
    %7 = arith.addf %3, %6 : vector<8x64xf32>
    %c0_6 = arith.constant 0 : index
    %c0_7 = arith.constant 0 : index
    %8 = vector.load %arg7[%c0_6, %c0_7] : memref<8x64xf32, #tpu.memory_space<vmem>>, vector<8x64xf32>
    tpu.vector_store %arg7[%c0_6, %c0_7], %7 {strides = array<i32>} : memref<8x64xf32, #tpu.memory_space<vmem>>, vector<8x64xf32>,
    %c0_i32_8 = arith.constant 0 : i32
    %9 = arith.cmpi eq, %arg2, %c0_i32_8 : i32
    %10 = arith.extui %9 : i1 to i32
    %c0_i32_9 = arith.constant 0 : i32
    %11 = arith.cmpi ne, %10, %c0_i32_9 : i32
    scf.if %11 {
      %c0_10 = arith.constant 0 : index
      %c0_11 = arith.constant 0 : index
      %12 = vector.load %arg7[%c0_10, %c0_11] : memref<8x64xf32, #tpu.memory_space<vmem>>, vector<8x64xf32>
      %c0_12 = arith.constant 0 : index
      %c0_13 = arith.constant 0 : index
      %13 = vector.load %arg5[%c0_12, %c0_13] : memref<1x64xf32, #tpu.memory_space<vmem>>, vector<1x64xf32>
      %14 = vector.broadcast %13 : vector<1x64xf32> to vector<8x64xf32>
      %15 = arith.addf %12, %14 : vector<8x64xf32>
      %c0_14 = arith.constant 0 : index
      %c0_15 = arith.constant 0 : index
      %16 = vector.load %arg6[%c0_14, %c0_15] : memref<8x64xf32, #tpu.memory_space<vmem>>, vector<8x64xf32>
      tpu.vector_store %arg6[%c0_14, %c0_15], %15 {strides = array<i32>} : memref<8x64xf32, #tpu.memory_space<vmem>>, vector<8x64xf32>,
    } else {
    }
    return
  }
  func.func @transform_0(%arg0: i32, %arg1: i32, %arg2: i32) -> (i32, i32) {
    %c0_i32 = arith.constant 0 : i32
    return %arg0, %arg2 : i32, i32
  }
  func.func @transform_1(%arg0: i32, %arg1: i32, %arg2: i32) -> (i32, i32) {
    %c0_i32 = arith.constant 0 : i32
    return %arg2, %arg1 : i32, i32
  }
  func.func @transform_2(%arg0: i32, %arg1: i32, %arg2: i32) -> (i32, i32) {
    %c0_i32 = arith.constant 0 : i32
    %c0_i32_0 = arith.constant 0 : i32
    return %c0_i32, %arg1 : i32, i32
  }
  func.func @transform_3(%arg0: i32, %arg1: i32, %arg2: i32) -> (i32, i32) {
    %c0_i32 = arith.constant 0 : i32
    return %arg0, %arg1 : i32, i32
  }
}

</mosaic_0001>

<bundles_post_ra>
// kernel: tpu_custom_call.1
= control target key start
LH: loop header
LB: loop body
LE: loop exit
PB: predicated region body
PF: predicated region fallthrough
CT: control target
= control target key end

     0   :  { %8 = vsyncpa [#allocation4], 0  ;;  %s243_s0 = inlined_call_operand.hbm [shape: f32[8,64], index: 0, kind: input, shape index: {}]   ;;  %s244_s1 = inlined_call_operand.hbm [shape: f32[64,64], index: 1, kind: input, shape index: {}]   ;;  %s245_s2 = inlined_call_operand.vmem [shape: f32[1,64], index: 2, kind: input, shape index: {}]   ;;  %s246_s3 = inlined_call_operand.hbm [shape: f32[8,64], index: 3, kind: output, shape index: {}]  }
   0x1   :  { %9 = vsyncpa [#allocation7], 0 }
   0x2   :  { %10 = vsyncpa [#allocation5], 0  ;;  %s16_s14 = sshll.u32 %s243_s0, 4  ;;  %s201_s15 = smov [#allocation3]   ;;  %s17_s14 = int_to_ptr.hbm [resolvable:$true] %s16_s14 }
   0x3   :  { %s18_s16 = sshll.u32 %s201_s15, 4  ;;  %s26_s19 = sshll.u32 %s244_s1, 4  ;;  %s19_s16 = int_to_ptr.vmem [resolvable:$true] %s18_s16  ;;  %s27_s19 = int_to_ptr.hbm [resolvable:$true] %s26_s19 }
   0x4   :  { %21 = dma.hbm_to_vmem [thread:$0]  %s17_s14, 128, %s19_s16, [#allocation4]  }
   0x5   :  { %s202_s20 = smov [#allocation6]   ;;  %s203_s22 = smov 128  }
   0x6   :  { %s28_s21 = sshll.u32 %s202_s20, 4  ;;  %s204_s23 = smov 8   ;;  %s29_s21 = int_to_ptr.vmem [resolvable:$true] %s28_s21 }
   0x7   :  { %34 = dma.hbm_to_vmem [thread:$0]  %s27_s19, 1024, %s29_s21, [#allocation7], %s203_s22, %s203_s22, %s204_s23  }
   0x8   :  { %195 = dma.done.wait [#allocation4], 128  }
   0x9   :  { %196 = vsyncadd [#allocation4], 4294967168 }
   0xa   :  { %197 = dma.done.wait [#allocation7], 1024  }
   0xb   :  { %198 = vsyncadd [#allocation7], 4294966272  ;;  %vm49_vm0 = vcmask 523264   ;;  %v205_v0 = vmov 0.0   ;;  %v60_v1 = vld [vmem:[#allocation6 + $0x38] sm:$0xff]  ;;  %v59_v2 = vld [vmem:[#allocation6 + $0x30] sm:$0xff] }
   0xc   :  { %50 = vst.msk [vmem:[#allocation2] sm:$0xff] %vm49_vm0, %v205_v0  ;;  %73 = vmatpush.msra.mxu0 %v60_v1  ;;  %v58_v3 = vld [vmem:[#allocation6 + $0x28] sm:$0xff]  ;;  %v57_v4 = vld [vmem:[#allocation6 + $0x20] sm:$0xff]  ;;  %v56_v5 = vld [vmem:[#allocation6 + $0x18] sm:$0xff]  ;;  %s206_s24 = smov [#allocation8]   ;;  %s104_s28 = sshll.u32 %s246_s3, 4  ;;  %s105_s28 = int_to_ptr.hbm [resolvable:$true] %s104_s28 }
   0xd   :  { %v55_v6 = vld [vmem:[#allocation6 + $0x10] sm:$0xff]  ;;  %v54_v7 = vld [vmem:[#allocation6 + $0x8] sm:$0xff]  ;;  %v53_v8 = vld [vmem:[#allocation6] sm:$0xff]  ;;  %s102_s25 = sshll.u32 %s206_s24, 4  ;;  %s103_s25 = int_to_ptr.vmem [resolvable:$true] %s102_s25 }
   0xe   :  { %74 = vmatpush.msra.mxu0 %v59_v2  ;;  %v52_v9 = vld [vmem:[#allocation3] sm:$0xff]  ;;  %v122_v13 = vld [vmem:[%s245_s2] ss:$0 sm:$0xff] }
  0x10   :  { %75 = vmatpush.msra.mxu0 %v58_v3 }
  0x12   :  { %76 = vmatpush.msra.mxu0 %v57_v4 }
  0x13   :  { %v51_v10 = vld [vmem:[#allocation2] sm:$0xff] }
  0x14   :  { %77 = vmatpush.msra.mxu0 %v56_v5 }
  0x16   :  { %78 = vmatpush.msra.mxu0 %v55_v6 }
  0x18   :  { %79 = vmatpush.msra.mxu0 %v54_v7 }
  0x1a   :  { %80 = vmatpush.msra.mxu0 %v53_v8 }
  0x1b   :  { %115 = vmatmul.msk.f32.vlgmr.msra.gmra.mxu0 %vm49_vm0, %v52_v9 }
  0x98   :  { %v82_v11 = vpop.f32.mrf.mxu0 }
  0x99   :  { %v85_v12 = vadd.f32 %v82_v11, %v51_v10 }
  0x9b   :  { %86 = vst.msk [vmem:[#allocation2] sm:$0xff] %vm49_vm0, %v85_v12 }
  0xa2   :  { %v90_v14 = vld [vmem:[#allocation2] sm:$0xff] }
  0xa3   :  { %v95_v15 = vadd.f32 %v122_v13, %v90_v14 }
  0xa5   :  { %96 = vst.msk [vmem:[#allocation8] sm:$0xff] %vm49_vm0, %v95_v15 }
  0xa6   :  { %107 = dma.vmem_to_hbm [thread:$0]  %s103_s25, 128, %s105_s28, [#allocation5]  }
  0xa7   :  { %199 = dma.done.wait [#allocation5], 128  }
  0xa8   :  { %200 = vsyncadd [#allocation5], 4294967168 }
  0xa9   :  { %112 = vsyncpa [#allocation4], 1 }
  0xaa   :  { %113 = vsyncpa [#allocation7], 1 }
  0xab   :  { %114 = vsyncpa [#allocation5], 1 }

</bundles_post_ra>
